<compile_context>
chip_gen: v7x
topology: tpu7x:2x2x1
jax: 0.10.0
libtpu: 0.0.40
codegen_flags: <defaults>
</compile_context>

<pallas_src>
import jax
import jax.numpy as jnp
from jax.experimental import pallas as pl
from jax.experimental.pallas import tpu as pltpu


def policy_kernel(x_ref, w1_ref, b1_ref, w2_ref, b2_ref, o_ref):
    # x_ref:  (TB, 4)    batch tile of CartPole states
    # w1_ref: (4, 128)   fc1 weight, stored (in_features, out_features)
    # b1_ref: (1, 128)   fc1 bias
    # w2_ref: (2, 128)   fc2 weight, lane-dense (out, in) == PyTorch layout
    # b2_ref: (1, 2)     fc2 bias
    # o_ref:  (TB, 2)    per-state action probabilities
    x = x_ref[...]                       # (TB, 4) f32
    w1 = w1_ref[...]                     # (4, 128)

    # ---- fc1 + ReLU on the VPU: h[b, :] = b1 + sum_i x[b, i] * W1[i, :] ----
    h = b1_ref[...] + x[:, 0:1] * w1[0:1, :]
    h = h + x[:, 1:2] * w1[1:2, :]
    h = h + x[:, 2:3] * w1[2:3, :]
    h = h + x[:, 3:4] * w1[3:4, :]
    h = jnp.maximum(h, 0.0)              # (TB, 128)

    # ---- fc2 collapsed to a single logit difference + stable sigmoid ----
    # softmax([l0, l1])[0] == sigmoid(l0 - l1); (l0 - l1) = h @ (w2[0]-w2[1]) + (b2[0]-b2[1])
    w2 = w2_ref[...]                                      # (2, 128)
    w2d = w2[0:1, :] - w2[1:2, :]                         # (1, 128)
    b2d = b2_ref[:, 0:1] - b2_ref[:, 1:2]                 # (1, 1)
    z = jnp.sum(h * w2d, axis=-1, keepdims=True) + b2d    # (TB, 1) = l0 - l1

    # Numerically-stable sigmoid built from exp (EUP) + exact divide.
    ez = jnp.exp(-jnp.abs(z))                             # (TB, 1)
    p_hi = 1.0 / (1.0 + ez)                               # sigmoid(|z|)
    p0 = jnp.where(z >= 0.0, p_hi, 1.0 - p_hi)            # (TB, 1)

    # Single lane-wise store of [p0, 1 - p0]  -> probs sum to exactly 1.
    lane = jax.lax.broadcasted_iota(jnp.int32, (x.shape[0], 2), 1)  # (TB, 2)
    o_ref[...] = jnp.where(lane == 0, p0, 1.0 - p0)


_MAX_TILE_ROWS = 2048  # (2048,128) f32 intermediates ~1 MiB: tiny vs any VMEM budget


def _tensorcores_per_chip():
    try:
        kind = jax.devices()[0].device_kind.lower()
        if "v7" in kind:
            return 2
    except Exception:
        pass
    return 1


def _tile_and_grid(batch):
    """Return (padded_batch, tile_rows, grid_steps).

    One big step on single-TC chips; 2 even 'parallel' steps on v7x once the
    batch is large enough to feed both cores.  Tiles are multiples of 8 rows.
    """
    pb = -(-batch // 8) * 8                       # pad to sublane multiple
    cores = _tensorcores_per_chip()
    steps = cores if (cores > 1 and pb >= 512) else 1
    steps = max(steps, -(-pb // _MAX_TILE_ROWS))  # cap tile size (paranoia only)
    tb = -(-(-(-pb // steps)) // 8) * 8           # ceil(pb/steps) rounded up to 8
    return tb * steps, tb, steps


@jax.jit
def policy_forward_batch(x, w1, b1, w2, b2):
    """x: (B, 4) f32 states -> (B, 2) per-state action probabilities."""
    batch = x.shape[0]
    pb, tb, steps = _tile_and_grid(batch)
    if pb != batch:
        x = jnp.pad(x, ((0, pb - batch), (0, 0)))     # zero rows: relu(b1) etc., discarded
    out = pl.pallas_call(
        policy_kernel,
        out_shape=jax.ShapeDtypeStruct((pb, 2), jnp.float32),
        grid=(steps,),
        in_specs=[
            pl.BlockSpec((tb, 4), lambda i: (i, 0)),      # states (batch-tiled)
            pl.BlockSpec((4, 128), lambda i: (0, 0)),     # W1 (resident)
            pl.BlockSpec((1, 128), lambda i: (0, 0)),     # b1 (resident)
            pl.BlockSpec((2, 128), lambda i: (0, 0)),     # W2 lane-dense (resident)
            pl.BlockSpec((1, 2), lambda i: (0, 0)),       # b2 (resident)
        ],
        out_specs=pl.BlockSpec((tb, 2), lambda i: (i, 0)),
        compiler_params=pltpu.CompilerParams(
            dimension_semantics=("parallel",)),           # megacore split on v7x
    )(x, w1, b1, w2, b2)
    return out[:batch]


def policy_forward(x, params):
    """Single CartPole state x: (4,) -> (2,) action probs (PyTorch forward)."""
    # TODO(synk): for real REINFORCE rollouts, batch environment states or fuse
    # categorical sampling (pltpu.prng_seed/prng_random_bits) + log-prob into the
    # kernel; at B=1 wall time is pure dispatch overhead on every TPU generation.
    w1, b1, w2, b2 = params
    return policy_forward_batch(x.reshape(1, 4), w1, b1, w2, b2).reshape(2)


def init_params(key):
    """Deterministic init mimicking nn.Linear's U(-1/sqrt(fan_in), 1/sqrt(fan_in)).

    Shapes/dtypes are already kernel-ready (f32, biases 2-D, fc2 lane-dense) so
    the forward wrapper does no per-call casting or reshaping.
    """
    k1, k2, k3, k4 = jax.random.split(key, 4)
    bound1 = 1.0 / jnp.sqrt(4.0)
    bound2 = 1.0 / jnp.sqrt(128.0)
    w1 = jax.random.uniform(k1, (4, 128), jnp.float32, -bound1, bound1)   # (in, out)
    b1 = jax.random.uniform(k2, (1, 128), jnp.float32, -bound1, bound1)
    w2 = jax.random.uniform(k3, (2, 128), jnp.float32, -bound2, bound2)   # (out, in)
    b2 = jax.random.uniform(k4, (1, 2), jnp.float32, -bound2, bound2)
    return w1, b1, w2, b2


if __name__ == "__main__":
    key = jax.random.PRNGKey(0)
    kx, kp = jax.random.split(key)

    params = init_params(kp)
    w1, b1, w2, b2 = params

    # Small batch of CartPole states (B=16 -> a single 16-row grid step).
    B = 16
    xb = jax.random.normal(kx, (B, 4), jnp.float32)

    probs_b = jax.block_until_ready(policy_forward_batch(xb, w1, b1, w2, b2))
    # Single-state path, identical semantics to the PyTorch module's forward
    # (softmax over the 2 actions).
    probs1 = jax.block_until_ready(policy_forward(xb[0], params))

    # Pure-JAX reference.
    h_ref = jnp.maximum(xb @ w1 + b1, 0.0)
    logits_ref = h_ref @ w2.T + b2
    probs_ref = jax.nn.softmax(logits_ref, axis=-1)

    assert probs_b.shape == (B, 2)
    assert jnp.allclose(probs_b, probs_ref, atol=1e-3, rtol=1e-3)
    # p1 = 1 - p0 in-kernel -> rows sum to 1 up to a final-add ulp.
    assert jnp.allclose(jnp.sum(probs_b, axis=-1), 1.0, atol=1e-5)
    assert probs1.shape == (2,)
    assert jnp.allclose(probs1, probs_ref[0], atol=1e-3, rtol=1e-3)

    print("KERNEL_OK")
</pallas_src>

<mosaic_0001>
module attributes {stable_mosaic.version = 11 : i64} {
  func.func @policy_kernel(%arg0: i32, %arg1: memref<16x4xf32, #tpu.memory_space<vmem>>, %arg2: memref<4x128xf32, #tpu.memory_space<vmem>>, %arg3: memref<1x128xf32, #tpu.memory_space<vmem>>, %arg4: memref<2x128xf32, #tpu.memory_space<vmem>>, %arg5: memref<1x2xf32, #tpu.memory_space<vmem>>, %arg6: memref<16x2xf32, #tpu.memory_space<vmem>>) attributes {dimension_semantics = [#tpu.dimension_semantics<parallel>], iteration_bounds = array<i64: 1>, scalar_prefetch = 0 : i64, scratch_operands = 0 : i64, tpu.core_type = #tpu.core_type<tc>, window_params = [{transform_indices = @transform_0, window_bounds = array<i64: 16, 4>}, {pipeline_mode = #tpu.pipeline_mode<synchronous>, transform_indices = @transform_1, window_bounds = array<i64: 4, 128>}, {pipeline_mode = #tpu.pipeline_mode<synchronous>, transform_indices = @transform_2, window_bounds = array<i64: 1, 128>}, {pipeline_mode = #tpu.pipeline_mode<synchronous>, transform_indices = @transform_3, window_bounds = array<i64: 2, 128>}, {pipeline_mode = #tpu.pipeline_mode<synchronous>, transform_indices = @transform_4, window_bounds = array<i64: 1, 2>}, {transform_indices = @transform_5, window_bounds = array<i64: 16, 2>}]} {
    %c0 = arith.constant 0 : index
    %c0_0 = arith.constant 0 : index
    %0 = vector.load %arg1[%c0, %c0_0] : memref<16x4xf32, #tpu.memory_space<vmem>>, vector<16x4xf32>
    %c0_1 = arith.constant 0 : index
    %c0_2 = arith.constant 0 : index
    %1 = vector.load %arg2[%c0_1, %c0_2] : memref<4x128xf32, #tpu.memory_space<vmem>>, vector<4x128xf32>
    %c0_3 = arith.constant 0 : index
    %c0_4 = arith.constant 0 : index
    %2 = vector.load %arg3[%c0_3, %c0_4] : memref<1x128xf32, #tpu.memory_space<vmem>>, vector<1x128xf32>
    %3 = vector.extract_strided_slice %0 {offsets = [0, 0], sizes = [16, 1], strides = [1, 1]} : vector<16x4xf32> to vector<16x1xf32>
    %4 = vector.extract_strided_slice %1 {offsets = [0, 0], sizes = [1, 128], strides = [1, 1]} : vector<4x128xf32> to vector<1x128xf32>
    %5 = vector.broadcast %3 : vector<16x1xf32> to vector<16x128xf32>
    %6 = vector.broadcast %4 : vector<1x128xf32> to vector<16x128xf32>
    %7 = arith.mulf %5, %6 : vector<16x128xf32>
    %8 = vector.broadcast %2 : vector<1x128xf32> to vector<16x128xf32>
    %9 = arith.addf %8, %7 : vector<16x128xf32>
    %10 = vector.extract_strided_slice %0 {offsets = [0, 1], sizes = [16, 1], strides = [1, 1]} : vector<16x4xf32> to vector<16x1xf32>
    %11 = vector.extract_strided_slice %1 {offsets = [1, 0], sizes = [1, 128], strides = [1, 1]} : vector<4x128xf32> to vector<1x128xf32>
    %12 = vector.broadcast %10 : vector<16x1xf32> to vector<16x128xf32>
    %13 = vector.broadcast %11 : vector<1x128xf32> to vector<16x128xf32>
    %14 = arith.mulf %12, %13 : vector<16x128xf32>
    %15 = arith.addf %9, %14 : vector<16x128xf32>
    %16 = vector.extract_strided_slice %0 {offsets = [0, 2], sizes = [16, 1], strides = [1, 1]} : vector<16x4xf32> to vector<16x1xf32>
    %17 = vector.extract_strided_slice %1 {offsets = [2, 0], sizes = [1, 128], strides = [1, 1]} : vector<4x128xf32> to vector<1x128xf32>
    %18 = vector.broadcast %16 : vector<16x1xf32> to vector<16x128xf32>
    %19 = vector.broadcast %17 : vector<1x128xf32> to vector<16x128xf32>
    %20 = arith.mulf %18, %19 : vector<16x128xf32>
    %21 = arith.addf %15, %20 : vector<16x128xf32>
    %22 = vector.extract_strided_slice %0 {offsets = [0, 3], sizes = [16, 1], strides = [1, 1]} : vector<16x4xf32> to vector<16x1xf32>
    %23 = vector.extract_strided_slice %1 {offsets = [3, 0], sizes = [1, 128], strides = [1, 1]} : vector<4x128xf32> to vector<1x128xf32>
    %24 = vector.broadcast %22 : vector<16x1xf32> to vector<16x128xf32>
    %25 = vector.broadcast %23 : vector<1x128xf32> to vector<16x128xf32>
    %26 = arith.mulf %24, %25 : vector<16x128xf32>
    %27 = arith.addf %21, %26 : vector<16x128xf32>
    %cst = arith.constant 0.000000e+00 : f32
    %28 = vector.broadcast %cst : f32 to vector<16x128xf32>
    %29 = arith.maximumf %27, %28 : vector<16x128xf32>
    %c0_5 = arith.constant 0 : index
    %c0_6 = arith.constant 0 : index
    %30 = vector.load %arg4[%c0_5, %c0_6] : memref<2x128xf32, #tpu.memory_space<vmem>>, vector<2x128xf32>
    %31 = vector.extract_strided_slice %30 {offsets = [0, 0], sizes = [1, 128], strides = [1, 1]} : vector<2x128xf32> to vector<1x128xf32>
    %32 = vector.extract_strided_slice %30 {offsets = [1, 0], sizes = [1, 128], strides = [1, 1]} : vector<2x128xf32> to vector<1x128xf32>
    %33 = arith.subf %31, %32 : vector<1x128xf32>
    %c0_7 = arith.constant 0 : index
    %c0_8 = arith.constant 0 : index
    %34 = vector.load %arg5[%c0_7, %c0_8] : memref<1x2xf32, #tpu.memory_space<vmem>>, vector<1x1xf32>
    %c0_9 = arith.constant 0 : index
    %c1 = arith.constant 1 : index
    %35 = vector.load %arg5[%c0_9, %c1] : memref<1x2xf32, #tpu.memory_space<vmem>>, vector<1x1xf32>
    %36 = arith.subf %34, %35 : vector<1x1xf32>
    %37 = vector.broadcast %33 : vector<1x128xf32> to vector<16x128xf32>
    %38 = arith.mulf %29, %37 : vector<16x128xf32>
    %cst_10 = arith.constant dense<0.000000e+00> : vector<16xf32>
    %39 = vector.multi_reduction <add>, %38, %cst_10 [1] : vector<16x128xf32> to vector<16xf32>
    %40 = vector.shape_cast %39 : vector<16xf32> to vector<16x1xf32>
    %41 = vector.broadcast %36 : vector<1x1xf32> to vector<16x1xf32>
    %42 = arith.addf %40, %41 : vector<16x1xf32>
    %43 = math.absf %42 : vector<16x1xf32>
    %cst_11 = arith.constant 0.000000e+00 : f32
    %44 = vector.broadcast %cst_11 : f32 to vector<16x1xf32>
    %45 = arith.subf %44, %43 : vector<16x1xf32>
    %46 = math.exp %45 : vector<16x1xf32>
    %cst_12 = arith.constant 1.000000e+00 : f32
    %47 = vector.broadcast %cst_12 : f32 to vector<16x1xf32>
    %48 = arith.addf %47, %46 : vector<16x1xf32>
    %cst_13 = arith.constant 1.000000e+00 : f32
    %49 = vector.broadcast %cst_13 : f32 to vector<16x1xf32>
    %50 = arith.divf %49, %48 : vector<16x1xf32>
    %cst_14 = arith.constant 0.000000e+00 : f32
    %51 = vector.broadcast %cst_14 : f32 to vector<16x1xf32>
    %52 = arith.cmpf oge, %42, %51 : vector<16x1xf32>
    %cst_15 = arith.constant 1.000000e+00 : f32
    %53 = vector.broadcast %cst_15 : f32 to vector<16x1xf32>
    %54 = arith.subf %53, %50 : vector<16x1xf32>
    %55 = arith.select %52, %50, %54 : vector<16x1xi1>, vector<16x1xf32>
    %56 = tpu.iota {dimensions = array<i32: 1>} : vector<16x2xi32>
    %c0_i32 = arith.constant 0 : i32
    %57 = vector.broadcast %c0_i32 : i32 to vector<16x2xi32>
    %58 = arith.cmpi eq, %56, %57 : vector<16x2xi32>
    %cst_16 = arith.constant 1.000000e+00 : f32
    %59 = vector.broadcast %cst_16 : f32 to vector<16x1xf32>
    %60 = arith.subf %59, %55 : vector<16x1xf32>
    %61 = vector.shape_cast %55 : vector<16x1xf32> to vector<16x1xf32>
    %62 = vector.broadcast %61 : vector<16x1xf32> to vector<16x2xf32>
    %63 = vector.shape_cast %60 : vector<16x1xf32> to vector<16x1xf32>
    %64 = vector.broadcast %63 : vector<16x1xf32> to vector<16x2xf32>
    %65 = arith.select %58, %62, %64 : vector<16x2xi1>, vector<16x2xf32>
    %c0_17 = arith.constant 0 : index
    %c0_18 = arith.constant 0 : index
    %66 = vector.load %arg6[%c0_17, %c0_18] : memref<16x2xf32, #tpu.memory_space<vmem>>, vector<16x2xf32>
    tpu.vector_store %arg6[%c0_17, %c0_18], %65 {strides = array<i32>} : memref<16x2xf32, #tpu.memory_space<vmem>>, vector<16x2xf32>,
    return
  }
  func.func @transform_0(%arg0: i32) -> (i32, i32) {
    %c0_i32 = arith.constant 0 : i32
    %c0_i32_0 = arith.constant 0 : i32
    return %arg0, %c0_i32 : i32, i32
  }
  func.func @transform_1(%arg0: i32) -> (i32, i32) {
    %c0_i32 = arith.constant 0 : i32
    %c0_i32_0 = arith.constant 0 : i32
    %c0_i32_1 = arith.constant 0 : i32
    return %c0_i32, %c0_i32_0 : i32, i32
  }
  func.func @transform_2(%arg0: i32) -> (i32, i32) {
    %c0_i32 = arith.constant 0 : i32
    %c0_i32_0 = arith.constant 0 : i32
    %c0_i32_1 = arith.constant 0 : i32
    return %c0_i32, %c0_i32_0 : i32, i32
  }
  func.func @transform_3(%arg0: i32) -> (i32, i32) {
    %c0_i32 = arith.constant 0 : i32
    %c0_i32_0 = arith.constant 0 : i32
    %c0_i32_1 = arith.constant 0 : i32
    return %c0_i32, %c0_i32_0 : i32, i32
  }
  func.func @transform_4(%arg0: i32) -> (i32, i32) {
    %c0_i32 = arith.constant 0 : i32
    %c0_i32_0 = arith.constant 0 : i32
    %c0_i32_1 = arith.constant 0 : i32
    return %c0_i32, %c0_i32_0 : i32, i32
  }
  func.func @transform_5(%arg0: i32) -> (i32, i32) {
    %c0_i32 = arith.constant 0 : i32
    %c0_i32_0 = arith.constant 0 : i32
    return %arg0, %c0_i32 : i32, i32
  }
}

</mosaic_0001>

<bundles_post_ra>
// kernel: policy_forward_batch.1
= control target key start
LH: loop header
LB: loop body
LE: loop exit
PB: predicated region body
PF: predicated region fallthrough
CT: control target
= control target key end

     0   :  { %v203_v0 = vmov 1   ;;  %v204_v1 = vmov 0   ;;  %v205_v4 = vmov 2   ;;  %v206_v5 = vmov 3   ;;  %s264_s0 = inlined_call_operand.vmem [shape: f32[16,4], index: 0, kind: input, shape index: {}]   ;;  %s265_s1 = inlined_call_operand.vmem [shape: f32[4,128], index: 1, kind: input, shape index: {}]   ;;  %s266_s2 = inlined_call_operand.vmem [shape: f32[1,128], index: 2, kind: input, shape index: {}]   ;;  %s267_s3 = inlined_call_operand.vmem [shape: f32[2,128], index: 3, kind: input, shape index: {}]   ;;  %s268_s4 = inlined_call_operand.vmem [shape: f32[1,2], index: 4, kind: input, shape index: {}]   ;;  %s269_s5 = inlined_call_operand.vmem [shape: f32[16,2], index: 5, kind: output, shape index: {}]  }
   0x1   :  { %188 = vset.pattern.permute.xlu1 %v203_v0  ;;  %187 = vset.pattern.permute.xlu0 %v204_v1  ;;  %v20_v2 = vld [vmem:[%s264_s0] sm:$0xff]  ;;  %v21_v3 = vld [vmem:[%s264_s0 + $0x8] sm:$0xff]  ;;  %v34_v6 = vlaneseq  ;;  %vm174_vm3 = vcmask 15360  }
   0x2   :  { %49 = vperm.xlu1 %188, %v20_v2   ;;  %26 = vperm.xlu0 %187, %v20_v2   ;;  %v22_v9 = vld [vmem:[%s265_s1] sm:$0xf] }
   0x3   :  { %v35_v7 = vshrl.u32 %v34_v6, 7  ;;  %v181_v19 = vld [vmem:[%s266_s2] ss:$0 sm:$0xff] }
   0x4   :  { %v98_v21 = vld [vmem:[%s267_s3] sm:$0x3]  ;;  %s207_s3 = smov 127  }
   0x5   :  { %v36_v8 = vsub.s32 0, %v35_v7  ;;  %v58_v13 = vsub.s32 1, %v35_v7  ;;  %v74_v14 = vsub.s32 2, %v35_v7  ;;  %v90_v20 = vsub.s32 3, %v35_v7  ;;  %v103_v50 = vld [vmem:[%s268_s4] sm:$0x1] }
   0x6   :  { %53 = vperm.xlu1 %188, %v21_v3   ;;  %31 = vperm.xlu0 %187, %v21_v3   ;;  %v100_v29 = vrot.slane %v98_v21, 1 }
   0x7   :  { %v37_v12 = vrot.slane %v22_v9, %v36_v8  ;;  %v59_v22 = vrot.slane %v22_v9, %v58_v13  ;;  %v75_v24 = vrot.slane %v22_v9, %v74_v14  ;;  %v91_v30 = vrot.slane %v22_v9, %v90_v20 }
   0x8   :  { %v102_v36 = vsub.f32 %v98_v21, %v100_v29  ;;  %v148_v13 = vand.u32 127, %v34_v6 }
   0xa   :  { %190 = vset.pattern.permute.xlu1 %v205_v4  ;;  %189 = vset.pattern.permute.xlu0 %v205_v4  ;;  %v112_v45 = vrot.slane %v102_v36, %v36_v8  ;;  %vm149_vm2 = vcmp.eq.s32.totalorder %v148_v13, 0 }
   0xb   :  { %69 = vperm.xlu1 %190, %v21_v3   ;;  %65 = vperm.xlu0 %189, %v20_v2  }
   0xf   :  { %191 = vset.pattern.permute.xlu1 %v206_v5  ;;  %192 = vset.pattern.permute.xlu0 %v206_v5 }
  0x10   :  { %81 = vperm.xlu1 %191, %v20_v2   ;;  %85 = vperm.xlu0 %192, %v21_v3  }
  0x14   :  { %194 = vset.pattern.permute.xlu1 %v204_v1  ;;  %193 = vset.pattern.permute.xlu0 %v204_v1 }
  0x81   :  { %v50_v10 = vpop.permute.xlu1 %49  ;;  %v27_v11 = vpop.permute.xlu0 %26 }
  0x82   :  { %v38_v17 = vmul.f32 %v37_v12, %v27_v11  ;;  %v60_v31 = vmul.f32 %v59_v22, %v50_v10 }
  0x84   :  { %v46_v25 = vadd.f32 %v181_v19, %v38_v17 }
  0x85   :  { %v54_v15 = vpop.permute.xlu1 %53  ;;  %v32_v16 = vpop.permute.xlu0 %31 }
  0x86   :  { %v39_v18 = vmul.f32 %v37_v12, %v32_v16  ;;  %v61_v26 = vmul.f32 %v59_v22, %v54_v15  ;;  %v62_v35 = vadd.f32 %v60_v31, %v46_v25 }
  0x88   :  { %v47_v23 = vadd.f32 %v181_v19, %v39_v18 }
  0x8a   :  { %v70_v27 = vpop.permute.xlu1 %69  ;;  %v66_v28 = vpop.permute.xlu0 %65  ;;  %v63_v32 = vadd.f32 %v61_v26, %v47_v23 }
  0x8b   :  { %v77_v33 = vmul.f32 %v75_v24, %v70_v27  ;;  %v76_v34 = vmul.f32 %v75_v24, %v66_v28 }
  0x8d   :  { %v79_v39 = vadd.f32 %v77_v33, %v63_v32  ;;  %v78_v40 = vadd.f32 %v76_v34, %v62_v35 }
  0x8f   :  { %v82_v37 = vpop.permute.xlu1 %81  ;;  %v86_v38 = vpop.permute.xlu0 %85 }
  0x90   :  { %v92_v41 = vmul.f32 %v91_v30, %v82_v37  ;;  %v93_v42 = vmul.f32 %v91_v30, %v86_v38 }
  0x92   :  { %v94_v43 = vadd.f32 %v92_v41, %v78_v40  ;;  %v95_v44 = vadd.f32 %v93_v42, %v79_v39 }
  0x94   :  { %v96_v46 = vmax.f32 %v94_v43, 0.0  ;;  %v97_v47 = vmax.f32 %v95_v44, 0.0 }
  0x96   :  { %v113_v48 = vmul.f32 %v112_v45, %v96_v46  ;;  %v114_v49 = vmul.f32 %v112_v45, %v97_v47 }
  0x98   :  { %115 = vadd.xlane.f32.xlu1 %v113_v48  ;;  %117 = vadd.xlane.f32.xlu0 %v114_v49 }
  0xa9   :  { %105 = vrot.lane.b32.xlu1 %v103_v50, %s207_s3 }
 0x125   :  { %v116_v51 = vpop.xlane.xlu1 %115  ;;  %v118_v55 = vpop.xlane.xlu0 %117 }
 0x129   :  { %v106_v52 = vpop.permute.xlu1 %105 }
 0x12a   :  { %v108_v53 = vsub.f32 %v103_v50, %v106_v52 }
 0x12c   :  { %v123_v54 = vrot.slane %v108_v53, %v36_v8 }
 0x12e   :  { %v125_v56 = vadd.f32 %v123_v54, %v116_v51  ;;  %v126_v57 = vadd.f32 %v123_v54, %v118_v55 }
 0x130   :  { %v127_v58 = vand.u32 2147483647, %v125_v56  ;;  %v128_v59 = vand.u32 2147483647, %v126_v57  ;;  %vm141_vm0 = vcmp.ge.f32.partialorder %v125_v56, 0.0  ;;  %vm142_vm1 = vcmp.ge.f32.partialorder %v126_v57, 0.0 }
 0x132   :  { %v129_v60 = vsub.f32 0.0, %v127_v58  ;;  %v130_v61 = vsub.f32 0.0, %v128_v59 }
 0x134   :  { %v131_v62 = vmul.f32 1.442695, %v129_v60  ;;  %v133_v63 = vmul.f32 1.442695, %v130_v61 }
 0x136   :  { %195 = vpow2.f32 %v131_v62 }
 0x137   :  { %197 = vpow2.f32 %v133_v63 }
 0x140   :  { %v196_v0 = vpop.eup %195 }
 0x141   :  { %v198_v1 = vpop.eup %197  ;;  %v135_v2 = vadd.f32 1.0, %v196_v0 }
 0x142   :  { %v136_v3 = vadd.f32 1.0, %v198_v1 }
 0x143   :  { %199 = vrcp.f32 %v135_v2 }
 0x144   :  { %201 = vrcp.f32 %v136_v3 }
 0x14d   :  { %v200_v4 = vpop.eup %199 }
 0x14e   :  { %v202_v5 = vpop.eup %201  ;;  %v143_v7 = vsub.f32 1.0, %v200_v4 }
 0x14f   :  { %v144_v8 = vsub.f32 1.0, %v202_v5 }
 0x150   :  { %v145_v9 = vsel %vm141_vm0, %v200_v4, %v143_v7 }
 0x151   :  { %154 = vperm.xlu0 %193, %v145_v9   ;;  %v146_v10 = vsel %vm142_vm1, %v202_v5, %v144_v8  ;;  %v150_v11 = vsub.f32 1.0, %v145_v9 }
 0x152   :  { %159 = vperm.xlu1 %194, %v146_v10   ;;  %v151_v12 = vsub.f32 1.0, %v146_v10 }
 0x156   :  { %164 = vperm.xlu1 %194, %v150_v11  }
 0x15a   :  { %169 = vperm.xlu1 %194, %v151_v12  }
 0x1d0   :  { %v155_v15 = vpop.permute.xlu0 %154 }
 0x1d1   :  { %v160_v14 = vpop.permute.xlu1 %159 }
 0x1d5   :  { %v165_v16 = vpop.permute.xlu1 %164 }
 0x1d6   :  { %v172_v17 = vsel %vm149_vm2, %v155_v15, %v165_v16 }
 0x1d7   :  { %175 = vst.msk [vmem:[%s269_s5] sm:$0xff] %vm174_vm3, %v172_v17 }
 0x1d9   :  { %v170_v18 = vpop.permute.xlu1 %169 }
 0x1da   :  { %v173_v19 = vsel %vm149_vm2, %v160_v14, %v170_v18 }
 0x1db   :  { %176 = vst.msk [vmem:[%s269_s5 + $0x8] sm:$0xff] %vm174_vm3, %v173_v19 }

</bundles_post_ra>
